<compile_context>
chip_gen: v7x
topology: tpu7x:2x2x1
jax: 0.10.0
libtpu: 0.0.40
codegen_flags: <defaults>
</compile_context>

<pallas_src>
import functools

import jax
import jax.numpy as jnp
from jax.experimental import pallas as pl
from jax.experimental.pallas import tpu as pltpu

LN_EPS = 1e-5
_BLOCK_BUDGET_ELEMS = 512 * 1024      # ~2 MiB of f32 per x block; in+out double-buffered
                                      # stays well under v5e's 16 MiB scoped default and
                                      # far under v7x's 64 MiB physical VMEM.
_VMEM_LIMIT_BYTES = 32 * 1024 * 1024  # explicit scoped-VMEM cap, valid on every gen.


# --------------------------------------------------------------------------------------
# Kernel
# --------------------------------------------------------------------------------------
def _layernorm_kernel(x_ref, g_ref, b_ref, o_ref, *, eps):
    # x block: (Bt, C, St, 128) -- spatial positions fill dense (St, 128) vregs,
    # channels are a leading axis, so the channel reduction is plain VALU adds.
    x = x_ref[...].astype(jnp.float32)
    g = g_ref[...].astype(jnp.float32)               # (1, C, 1, 1)
    b = b_ref[...].astype(jnp.float32)               # (1, C, 1, 1)

    mean = jnp.mean(x, axis=1, keepdims=True)        # (Bt, 1, St, 128)
    xc = x - mean
    var = jnp.mean(xc * xc, axis=1, keepdims=True)   # two-pass: no cancellation
    inv = 1.0 / (jnp.sqrt(var) + eps)                # eps OUTSIDE sqrt (matches module)

    o_ref[...] = (xc * inv * g + b).astype(o_ref.dtype)


# --------------------------------------------------------------------------------------
# Tile picker: blocks of shape (Bt, C, St, 128) sized against a VMEM budget
# --------------------------------------------------------------------------------------
def _choose_tiles(B, C, S0, budget_elems=_BLOCK_BUDGET_ELEMS):
    per_row = C * 128                                 # elems per unit of St, one batch elem
    st_cap = max(1, budget_elems // per_row)

    if S0 <= st_cap:
        # Whole spatial extent per step; fold batch elements into the block instead.
        St, S_pad = S0, S0
        bt_cap = max(1, budget_elems // (per_row * S0))
        if B >= 2:                                    # keep >=2 parallel steps (v7x megacore)
            bt_cap = min(bt_cap, B // 2)
        bt_cap = max(1, bt_cap)
        Bt = max(d for d in range(1, B + 1) if B % d == 0 and d <= bt_cap)
    else:
        # Tile spatially; St a multiple of 8 for aligned sublanes, pad S up to a multiple.
        Bt = 1
        St = max(8, (st_cap // 8) * 8)
        S_pad = pl.cdiv(S0, St) * St
    return Bt, St, S_pad


# --------------------------------------------------------------------------------------
# Wrapper
# --------------------------------------------------------------------------------------
def layernorm_pallas(x_nchw, g, b, eps=LN_EPS):
    """twindetr LayerNorm on an NCHW tensor (normalize over the channel dim)."""
    B, C, H, W = x_nchw.shape
    HW = H * W
    S0 = pl.cdiv(HW, 128)
    Bt, St, S_pad = _choose_tiles(B, C, S0)
    HW_pad = S_pad * 128

    x3 = x_nchw.reshape(B, C, HW)                     # free reshape, no transpose
    if HW_pad != HW:
        x3 = jnp.pad(x3, ((0, 0), (0, 0), (0, HW_pad - HW)))
    x4 = x3.reshape(B, C, S_pad, 128)                 # free: row-major metadata reshape
    g4 = jnp.asarray(g).reshape(1, C, 1, 1)
    b4 = jnp.asarray(b).reshape(1, C, 1, 1)

    kernel = functools.partial(_layernorm_kernel, eps=eps)

    out4 = pl.pallas_call(
        kernel,
        # Output in the input dtype (avoids a silent f32 upcast and 2x write traffic).
        out_shape=jax.ShapeDtypeStruct((B, C, S_pad, 128), x_nchw.dtype),
        grid=(B // Bt, S_pad // St),
        in_specs=[
            pl.BlockSpec((Bt, C, St, 128), lambda i, j: (i, 0, j, 0)),
            pl.BlockSpec((1, C, 1, 1), lambda i, j: (0, 0, 0, 0)),
            pl.BlockSpec((1, C, 1, 1), lambda i, j: (0, 0, 0, 0)),
        ],
        out_specs=pl.BlockSpec((Bt, C, St, 128), lambda i, j: (i, 0, j, 0)),
        compiler_params=pltpu.CompilerParams(
            dimension_semantics=("parallel", "parallel"),
            vmem_limit_bytes=_VMEM_LIMIT_BYTES),
    )(x4, g4, b4)

    out3 = out4.reshape(B, C, HW_pad)
    if HW_pad != HW:
        out3 = out3[:, :, :HW]
    return out3.reshape(B, C, H, W)


# --------------------------------------------------------------------------------------
# Pure-JAX reference (mirrors the PyTorch module exactly)
# --------------------------------------------------------------------------------------
def layernorm_ref(x, g, b, eps=LN_EPS):
    mean = jnp.mean(x, axis=1, keepdims=True)
    var = jnp.mean((x - mean) ** 2, axis=1, keepdims=True)   # unbiased=False
    std = jnp.sqrt(var)
    return (x - mean) / (std + eps) * g + b


# --------------------------------------------------------------------------------------
if __name__ == "__main__":
    key = jax.random.PRNGKey(0)
    kx, kg, kb = jax.random.split(key, 3)

    B, C, H, W = 2, 4, 16, 16                                 # NCHW, LayerNorm(dim=4)
    x = jax.random.normal(kx, (B, C, H, W), jnp.float32)
    g = 1.0 + 0.1 * jax.random.normal(kg, (1, C, 1, 1), jnp.float32)
    b = 0.1 * jax.random.normal(kb, (1, C, 1, 1), jnp.float32)

    fwd = jax.jit(layernorm_pallas)
    out = fwd(x, g, b)
    jax.block_until_ready(out)

    ref = layernorm_ref(x, g, b)
    assert out.shape == (B, C, H, W), out.shape
    assert out.dtype == x.dtype, out.dtype
    assert bool(jnp.all(jnp.isfinite(out)))
    assert bool(jnp.allclose(out, ref, atol=1e-5, rtol=1e-5)), float(
        jnp.max(jnp.abs(out - ref)))
    print("KERNEL_OK")
</pallas_src>

<mosaic_0001>
module attributes {stable_mosaic.version = 11 : i64} {
  func.func @_layernorm_kernel(%arg0: i32, %arg1: i32, %arg2: memref<1x4x2x128xf32, #tpu.memory_space<vmem>>, %arg3: memref<1x4x1x1xf32, #tpu.memory_space<vmem>>, %arg4: memref<1x4x1x1xf32, #tpu.memory_space<vmem>>, %arg5: memref<1x4x2x128xf32, #tpu.memory_space<vmem>>) attributes {dimension_semantics = [#tpu.dimension_semantics<parallel>, #tpu.dimension_semantics<parallel>], iteration_bounds = array<i64: 2, 1>, scalar_prefetch = 0 : i64, scratch_operands = 0 : i64, tpu.core_type = #tpu.core_type<tc>, window_params = [{transform_indices = @transform_0, window_bounds = array<i64: 1, 4, 2, 128>}, {pipeline_mode = #tpu.pipeline_mode<synchronous>, transform_indices = @transform_1, window_bounds = array<i64: 1, 4, 1, 1>}, {pipeline_mode = #tpu.pipeline_mode<synchronous>, transform_indices = @transform_2, window_bounds = array<i64: 1, 4, 1, 1>}, {transform_indices = @transform_3, window_bounds = array<i64: 1, 4, 2, 128>}]} {
    %c0 = arith.constant 0 : index
    %c0_0 = arith.constant 0 : index
    %c0_1 = arith.constant 0 : index
    %c0_2 = arith.constant 0 : index
    %0 = vector.load %arg2[%c0, %c0_0, %c0_1, %c0_2] : memref<1x4x2x128xf32, #tpu.memory_space<vmem>>, vector<1x4x2x128xf32>
    %c0_3 = arith.constant 0 : index
    %c0_4 = arith.constant 0 : index
    %c0_5 = arith.constant 0 : index
    %c0_6 = arith.constant 0 : index
    %1 = vector.load %arg3[%c0_3, %c0_4, %c0_5, %c0_6] : memref<1x4x1x1xf32, #tpu.memory_space<vmem>>, vector<1x4x1x1xf32>
    %c0_7 = arith.constant 0 : index
    %c0_8 = arith.constant 0 : index
    %c0_9 = arith.constant 0 : index
    %c0_10 = arith.constant 0 : index
    %2 = vector.load %arg4[%c0_7, %c0_8, %c0_9, %c0_10] : memref<1x4x1x1xf32, #tpu.memory_space<vmem>>, vector<1x4x1x1xf32>
    %cst = arith.constant dense<0.000000e+00> : vector<1x2x128xf32>
    %3 = vector.multi_reduction <add>, %0, %cst [1] : vector<1x4x2x128xf32> to vector<1x2x128xf32>
    %4 = vector.shape_cast %3 : vector<1x2x128xf32> to vector<1x1x2x128xf32>
    %cst_11 = arith.constant 4.000000e+00 : f32
    %5 = vector.broadcast %cst_11 : f32 to vector<1x1x2x128xf32>
    %6 = arith.divf %4, %5 : vector<1x1x2x128xf32>
    %7 = vector.broadcast %6 : vector<1x1x2x128xf32> to vector<1x4x2x128xf32>
    %8 = arith.subf %0, %7 : vector<1x4x2x128xf32>
    %9 = arith.mulf %8, %8 : vector<1x4x2x128xf32>
    %cst_12 = arith.constant dense<0.000000e+00> : vector<1x2x128xf32>
    %10 = vector.multi_reduction <add>, %9, %cst_12 [1] : vector<1x4x2x128xf32> to vector<1x2x128xf32>
    %11 = vector.shape_cast %10 : vector<1x2x128xf32> to vector<1x1x2x128xf32>
    %cst_13 = arith.constant 4.000000e+00 : f32
    %12 = vector.broadcast %cst_13 : f32 to vector<1x1x2x128xf32>
    %13 = arith.divf %11, %12 : vector<1x1x2x128xf32>
    %14 = math.sqrt %13 : vector<1x1x2x128xf32>
    %cst_14 = arith.constant 9.99999974E-6 : f32
    %15 = vector.broadcast %cst_14 : f32 to vector<1x1x2x128xf32>
    %16 = arith.addf %14, %15 : vector<1x1x2x128xf32>
    %cst_15 = arith.constant 1.000000e+00 : f32
    %17 = vector.broadcast %cst_15 : f32 to vector<1x1x2x128xf32>
    %18 = arith.divf %17, %16 : vector<1x1x2x128xf32>
    %19 = vector.broadcast %18 : vector<1x1x2x128xf32> to vector<1x4x2x128xf32>
    %20 = arith.mulf %8, %19 : vector<1x4x2x128xf32>
    %21 = vector.broadcast %1 : vector<1x4x1x1xf32> to vector<1x4x2x128xf32>
    %22 = arith.mulf %20, %21 : vector<1x4x2x128xf32>
    %23 = vector.broadcast %2 : vector<1x4x1x1xf32> to vector<1x4x2x128xf32>
    %24 = arith.addf %22, %23 : vector<1x4x2x128xf32>
    %c0_16 = arith.constant 0 : index
    %c0_17 = arith.constant 0 : index
    %c0_18 = arith.constant 0 : index
    %c0_19 = arith.constant 0 : index
    %25 = vector.load %arg5[%c0_16, %c0_17, %c0_18, %c0_19] : memref<1x4x2x128xf32, #tpu.memory_space<vmem>>, vector<1x4x2x128xf32>
    tpu.vector_store %arg5[%c0_16, %c0_17, %c0_18, %c0_19], %24 {strides = array<i32>} : memref<1x4x2x128xf32, #tpu.memory_space<vmem>>, vector<1x4x2x128xf32>,
    return
  }
  func.func @transform_0(%arg0: i32, %arg1: i32) -> (i32, i32, i32, i32) {
    %c0_i32 = arith.constant 0 : i32
    %c0_i32_0 = arith.constant 0 : i32
    %c0_i32_1 = arith.constant 0 : i32
    return %arg0, %c0_i32, %arg1, %c0_i32_0 : i32, i32, i32, i32
  }
  func.func @transform_1(%arg0: i32, %arg1: i32) -> (i32, i32, i32, i32) {
    %c0_i32 = arith.constant 0 : i32
    %c0_i32_0 = arith.constant 0 : i32
    %c0_i32_1 = arith.constant 0 : i32
    %c0_i32_2 = arith.constant 0 : i32
    %c0_i32_3 = arith.constant 0 : i32
    return %c0_i32, %c0_i32_0, %c0_i32_1, %c0_i32_2 : i32, i32, i32, i32
  }
  func.func @transform_2(%arg0: i32, %arg1: i32) -> (i32, i32, i32, i32) {
    %c0_i32 = arith.constant 0 : i32
    %c0_i32_0 = arith.constant 0 : i32
    %c0_i32_1 = arith.constant 0 : i32
    %c0_i32_2 = arith.constant 0 : i32
    %c0_i32_3 = arith.constant 0 : i32
    return %c0_i32, %c0_i32_0, %c0_i32_1, %c0_i32_2 : i32, i32, i32, i32
  }
  func.func @transform_3(%arg0: i32, %arg1: i32) -> (i32, i32, i32, i32) {
    %c0_i32 = arith.constant 0 : i32
    %c0_i32_0 = arith.constant 0 : i32
    %c0_i32_1 = arith.constant 0 : i32
    return %arg0, %c0_i32, %arg1, %c0_i32_0 : i32, i32, i32, i32
  }
}

</mosaic_0001>

<bundles_post_ra>
// kernel: layernorm_pallas.1
= control target key start
LH: loop header
LB: loop body
LE: loop exit
PB: predicated region body
PF: predicated region fallthrough
CT: control target
= control target key end

     0   :  { %s518_s12 = smov 0   ;;  %s520_s13 = smov 0   ;;  %s594_s0 = inlined_call_operand.vmem [shape: f32[2,4,2,128], index: 0, kind: input, shape index: {}]   ;;  %s595_s1 = inlined_call_operand.vmem [shape: f32[1,4,1,1], index: 1, kind: input, shape index: {}]   ;;  %s596_s2 = inlined_call_operand.vmem [shape: f32[1,4,1,1], index: 2, kind: input, shape index: {}]   ;;  %s597_s3 = inlined_call_operand.vmem [shape: f32[2,4,2,128], index: 3, kind: output, shape index: {}]  }
   0x1   :  { %s522_s14 = smov 0  }
   0x2 LB: > { %s25_s15 = sadd.s32 1, %s491_s13  ;;  %p425_p0 = scmp.ge.s32.totalorder %s495_s14, 1  ;;  %s495_s14 = sphi %s522_s14, %s13_s14   ;;  %s491_s13 = sphi %s520_s13, %s599_s13   ;;  %s487_s12 = sphi %s518_s12, %s598_s12  }
   0x3   : > { %p27_p1 = scmp.ge.s32.totalorder %s25_s15, 2  ;;  %p156_p2 = scmp.lt.s32.totalorder %s495_s14, 3 }
   0x5   : > { %s601_s15 = smov (%p27_p1, %s25_s15), 0  ;;  %p157_p3 = pnand %p425_p0, %p156_p2 }
   0x6   : > { %v432_v0 = vld [vmem:[%s595_s1 + $0x2] ss:$0 sm:$0xff] (!%p157_p3)  ;;  %v430_v1 = vld [vmem:[%s595_s1] ss:$0 sm:$0xff] (!%p157_p3)  ;;  %v497_v2 = vmov (!%p157_p3), 0   ;;  %p186_p4 = scmp.lt.s32.totalorder (!%p157_p3), %s487_s12, 1 }
   0x7   : > { %160 = sbr.rel (%p157_p3) target bundleno = 151 (0x97), region = 32  ;;  %468 = vset.pattern.permute.xlu1 (!%p157_p3), %v497_v2  ;;  %467 = vset.pattern.permute.xlu0 (!%p157_p3), %v497_v2  ;;  %v433_v3 = vld [vmem:[%s595_s1 + $0x3] ss:$0 sm:$0xff] (!%p157_p3)  ;;  %v431_v4 = vld [vmem:[%s595_s1 + $0x1] ss:$0 sm:$0xff] (!%p157_p3)  ;;  %vm214_vm0 = vcmask (!%p157_p3), 1041408  }
   0x8   : > { %283 = vperm.xlu1 (!%p157_p3), %468, %v432_v0   ;;  %275 = vperm.xlu0 (!%p157_p3), %467, %v430_v1   ;;  %v435_v5 = vld [vmem:[%s596_s2 + $0x1] ss:$0 sm:$0xff] (!%p157_p3)  ;;  %v434_v6 = vld [vmem:[%s596_s2] ss:$0 sm:$0xff] (!%p157_p3)  ;;  %v437_v7 = vld [vmem:[%s596_s2 + $0x3] ss:$0 sm:$0xff] (!%p157_p3) }
   0x9   : > { %v436_v8 = vld [vmem:[%s596_s2 + $0x2] ss:$0 sm:$0xff] (!%p157_p3) }
   0xc   : > { %287 = vperm.xlu1 (!%p157_p3), %468, %v433_v3   ;;  %279 = vperm.xlu0 (!%p157_p3), %467, %v431_v4  }
   0xe   : > { %s603_s12 = smov (!%p186_p4, %s487_s12), 1 }
   0xf   : > { %s440_s5 = sshll.u32 %s603_s12, 3 }
  0x10   : > { %319 = vperm.xlu1 %468, %v435_v5   ;;  %315 = vperm.xlu0 %467, %v434_v6   ;;  %s193_s8 = scalar_lea.vmem %s594_s0, %s440_s5  ;;  %s201_s11 = scalar_lea.vmem %s597_s3, %s440_s5 }
  0x11   : > { %v202_v9 = vld [vmem:[%s193_s8] sm:$0x3]  ;;  %v203_v10 = vld [vmem:[%s193_s8 + $0x2] sm:$0x3]  ;;  %v204_v13 = vld [vmem:[%s193_s8 + $0x4] sm:$0x3] }
  0x12   : > { %v215_v11 = vsel %vm214_vm0, %v202_v9, 0.0  ;;  %v216_v12 = vsel %vm214_vm0, %v203_v10, 0.0  ;;  %v218_v15 = vsel %vm214_vm0, %v204_v13, 0.0  ;;  %v205_v16 = vld [vmem:[%s193_s8 + $0x6] sm:$0x3] }
  0x13   : > { %v217_v14 = vadd.f32 %v216_v12, %v215_v11  ;;  %v220_v18 = vsel %vm214_vm0, %v205_v16, 0.0 }
  0x14   : > { %327 = vperm.xlu1 %468, %v437_v7   ;;  %323 = vperm.xlu0 %467, %v436_v8  }
  0x15   : > { %v219_v17 = vadd.f32 %v218_v15, %v217_v14 }
  0x17   : > { %v221_v19 = vadd.f32 %v220_v18, %v219_v17 }
  0x19   : > { %v223_v20 = vmul.f32 0.25, %v221_v19 }
  0x1b   : > { %v224_v21 = vsub.f32 %v202_v9, %v223_v20  ;;  %v225_v22 = vsub.f32 %v203_v10, %v223_v20  ;;  %v226_v23 = vsub.f32 %v204_v13, %v223_v20  ;;  %v227_v26 = vsub.f32 %v205_v16, %v223_v20 }
  0x1d   : > { %v228_v24 = vmul.f32 %v224_v21, %v224_v21  ;;  %v229_v25 = vmul.f32 %v225_v22, %v225_v22  ;;  %v230_v27 = vmul.f32 %v226_v23, %v226_v23  ;;  %v231_v31 = vmul.f32 %v227_v26, %v227_v26 }
  0x1f   : > { %v232_v28 = vsel %vm214_vm0, %v228_v24, 0.0  ;;  %v233_v29 = vsel %vm214_vm0, %v229_v25, 0.0  ;;  %v235_v32 = vsel %vm214_vm0, %v230_v27, 0.0  ;;  %v237_v34 = vsel %vm214_vm0, %v231_v31, 0.0 }
  0x20   : > { %v234_v30 = vadd.f32 %v233_v29, %v232_v28 }
  0x22   : > { %v236_v33 = vadd.f32 %v235_v32, %v234_v30 }
  0x24   : > { %v238_v35 = vadd.f32 %v237_v34, %v236_v33 }
  0x26   : > { %v239_v36 = vmul.f32 0.25, %v238_v35 }
  0x28   : > { %469 = vrsqrt.f32 %v239_v36  ;;  %vm242_vm1 = vcmp.eq.f32.partialorder %v239_v36, inf  ;;  %v245_v39 = vand.u32 2147483648, %v239_v36  ;;  %vm244_vm2 = vcmp.eq.f32.partialorder %v239_v36, 0.0 }
  0x32   : > { %v470_v37 = vpop.eup %469 }
  0x33   : > { %v241_v38 = vmul.f32 %v470_v37, %v239_v36 }
  0x35   : > { %v243_v40 = vsel %vm242_vm1, %v239_v36, %v241_v38 }
  0x36   : > { %v246_v41 = vsel %vm244_vm2, %v245_v39, %v243_v40 }
  0x37   : > { %v247_v42 = vadd.f32 1e-05, %v246_v41 }
  0x39   : > { %471 = vrcp.f32 %v247_v42 }
  0x43   : > { %v472_v43 = vpop.eup %471 }
  0x44   : > { %v250_v46 = vmul.f32 %v472_v43, %v224_v21  ;;  %v251_v47 = vmul.f32 %v472_v43, %v225_v22  ;;  %v252_v50 = vmul.f32 %v472_v43, %v226_v23  ;;  %v253_v52 = vmul.f32 %v472_v43, %v227_v26 }
  0x87   : > { %v284_v44 = vpop.permute.xlu1 %283  ;;  %v276_v45 = vpop.permute.xlu0 %275 }
  0x88   : > { %v290_v51 = vmul.f32 %v276_v45, %v250_v46  ;;  %v292_v58 = vmul.f32 %v284_v44, %v252_v50 }
  0x8b   : > { %v288_v48 = vpop.permute.xlu1 %287  ;;  %v280_v49 = vpop.permute.xlu0 %279 }
  0x8c   : > { %v291_v53 = vmul.f32 %v280_v49, %v251_v47  ;;  %v293_v59 = vmul.f32 %v288_v48, %v253_v52 }
  0x8f   : > { %v320_v54 = vpop.permute.xlu1 %319  ;;  %v316_v55 = vpop.permute.xlu0 %315 }
  0x90   : > { %v331_v56 = vadd.f32 %v320_v54, %v291_v53  ;;  %v330_v57 = vadd.f32 %v316_v55, %v290_v51 }
  0x92   : > { %335 = vst [vmem:[%s201_s11 + $0x2] sm:$0x3] %v331_v56  ;;  %334 = vst [vmem:[%s201_s11] sm:$0x3] %v330_v57 }
  0x93   : > { %v328_v60 = vpop.permute.xlu1 %327  ;;  %v324_v61 = vpop.permute.xlu0 %323 }
  0x94   : > { %v333_v62 = vadd.f32 %v328_v60, %v293_v59  ;;  %v332_v63 = vadd.f32 %v324_v61, %v292_v58 }
  0x96   : > { %337 = vst [vmem:[%s201_s11 + $0x6] sm:$0x3] %v333_v62  ;;  %336 = vst [vmem:[%s201_s11 + $0x4] sm:$0x3] %v332_v63 }
  0x97 PF: > { %s13_s14 = sadd.s32 1, %s495_s14   ;;  %s598_s12 = smov %s491_s13 }
  0x98   : > { %p10_p5 = scmp.ge.s32.totalorder %s13_s14, 4   ;;  %s599_s13 = smov %s601_s15 }
  0x9a   :  { %12 = sbr.rel (!%p10_p5) target bundleno = 2 (0x2), region = 62 }

</bundles_post_ra>
